<compile_context>
chip_gen: v5e
topology: v5e:2x2
jax: 0.10.0
libtpu: 0.0.40
codegen_flags: <defaults>
</compile_context>

<pallas_src>
import jax
import jax.numpy as jnp
from jax.experimental import pallas as pl
from jax.experimental.pallas import tpu as pltpu


_LANE = 128
_MIN_BLOCK_ROWS = 32        # 32-row granularity: layout-clean for f32 / bf16 / int8 sublane packing
_MIN_BLOCK_BYTES = 2 << 20  # never tile below ~2 MiB (amortize ~0.35 us fixed per-grid-step cost)
_MAX_BLOCK_BYTES = 8 << 20  # never tile above 8 MiB (2 in + 2 out double-buffered = 32 MiB << 64 MiB v7x VMEM)


def _round_up(a: int, b: int) -> int:
    return (a + b - 1) // b * b


def _vmem_capacity_bytes() -> int:
    """Per-core VMEM capacity; conservative (v7x = 64 MiB) fallback if the query fails."""
    try:
        return int(pltpu.get_tpu_info().vmem_capacity_bytes)
    except Exception:
        return 64 << 20


def _h_sigmoid_kernel(x_ref, o_ref):
    x = x_ref[...]
    # ReLU6(x + 3) / 6  ==  clip(x + 3, 0, 6) * (1/6).  4 VALU ops/element:
    # nowhere near a VLIW-slot bound at HBM arithmetic intensity, so leave it alone.
    o_ref[...] = (jnp.clip(x + 3.0, 0.0, 6.0) * (1.0 / 6.0)).astype(o_ref.dtype)


def _run_2d(x2d: jax.Array, out_dtype, donate: bool) -> jax.Array:
    """Run the kernel over a lane-dense (rows, 128*k) slab with generation-aware tiling."""
    rows, cols = x2d.shape
    itemsize = jnp.dtype(x2d.dtype).itemsize
    row_bytes = cols * itemsize
    total_bytes = rows * row_bytes

    vmem_cap = _vmem_capacity_bytes()
    gen_max = max(_MIN_BLOCK_BYTES, min(_MAX_BLOCK_BYTES, vmem_cap // 8))
    # Keep >= ~8 grid steps for large tensors; clamp to [2 MiB, gen_max].
    block_bytes = max(_MIN_BLOCK_BYTES, min(total_bytes // 8, gen_max))

    if rows <= _MIN_BLOCK_ROWS:
        block_rows = rows  # full-extent block: always layout-legal, single step is unavoidable
    else:
        tr = max(_MIN_BLOCK_ROWS,
                 (block_bytes // row_bytes) // _MIN_BLOCK_ROWS * _MIN_BLOCK_ROWS)
        # Never collapse to a single step when the tensor can be split:
        # >= 2 blocks engages both v7x TensorCores and the DMA pipeline.
        half = _round_up((rows + 1) // 2, _MIN_BLOCK_ROWS)
        block_rows = min(tr, half)
    grid_rows = pl.cdiv(rows, block_rows)

    # Explicit scoped-VMEM budget: 2 in-bufs + 2 out-bufs + headroom, capped to
    # ~3/4 of physical (48 MiB on v7x's 64 MiB; well under 128 MiB on v5e/v6e).
    blk_bytes = block_rows * row_bytes
    vmem_limit = min(vmem_cap * 3 // 4, 4 * blk_bytes + (16 << 20))
    vmem_limit = min(max(vmem_limit, 32 << 20), vmem_cap)

    call_kwargs = {}
    if donate and x2d.dtype == jnp.dtype(out_dtype):
        # Reuse the input HBM buffer for the output (halves peak footprint);
        # only when the caller has donated x.
        call_kwargs["input_output_aliases"] = {0: 0}

    return pl.pallas_call(
        _h_sigmoid_kernel,
        out_shape=jax.ShapeDtypeStruct((rows, cols), out_dtype),
        grid_spec=pltpu.PrefetchScalarGridSpec(
            num_scalar_prefetch=0,
            grid=(grid_rows,),
            in_specs=[pl.BlockSpec((block_rows, cols), lambda i: (i, 0))],
            out_specs=pl.BlockSpec((block_rows, cols), lambda i: (i, 0)),
        ),
        compiler_params=pltpu.CompilerParams(
            dimension_semantics=("parallel",),
            vmem_limit_bytes=int(vmem_limit),
            allow_input_fusion=[True],
        ),
        **call_kwargs,
    )(x2d)


def h_sigmoid(x: jax.Array, donate_input: bool = False) -> jax.Array:
    """Elementwise hard-sigmoid (ReLU6(x+3)/6) via a tiled, pipelined Pallas TPU kernel."""
    orig_shape = x.shape
    dtype = x.dtype
    n = x.size

    # PyTorch's `/ 6` promotes integer inputs to a floating result; do the same
    # instead of truncating the fractional output to 0/1.
    if jnp.issubdtype(dtype, jnp.floating):
        out_dtype = dtype
    else:
        out_dtype = jnp.float32
        x = x.astype(jnp.float32)

    if n == 0:
        return jnp.zeros(orig_shape, out_dtype)

    # Widest lane-dense column count dividing n exactly => zero-copy reshape,
    # no pad / slice passes (each would add a full extra HBM read+write).
    cols = None
    for c in (1024, 512, 256, 128):
        if n % c == 0:
            cols = c
            break

    if cols is not None:
        x2d = jnp.ravel(x).reshape(-1, cols)
        out2d = _run_2d(x2d, out_dtype, donate_input)
        return out2d.reshape(orig_shape)

    # Ragged fallback: kernel on the 128-aligned prefix, plain-jnp tail (<128 elems).
    # Avoids the old pad-whole-tensor + slice-whole-tensor extra HBM passes.
    x_flat = jnp.ravel(x)
    n_main = (n // _LANE) * _LANE
    tail = x_flat[n_main:]
    tail_out = (jnp.clip(tail + 3.0, 0.0, 6.0) * (1.0 / 6.0)).astype(out_dtype)
    if n_main == 0:
        return tail_out.reshape(orig_shape)
    main2d = x_flat[:n_main].reshape(-1, _LANE)
    main_out = _run_2d(main2d, out_dtype, False).reshape(-1)
    return jnp.concatenate([main_out, tail_out]).reshape(orig_shape)


if __name__ == "__main__":
    key = jax.random.PRNGKey(0)

    # NCHW input, small shape: batch=2, channels=4, spatial=16x16 (single-block path).
    x = jax.random.normal(key, (2, 4, 16, 16), dtype=jnp.float32) * 4.0
    y = jax.block_until_ready(h_sigmoid(x))
    y_ref = jnp.clip(x + 3.0, 0.0, 6.0) / 6.0
    assert y.shape == x.shape
    assert jnp.allclose(y, y_ref, atol=1e-6), "mismatch vs reference (aligned path)"

    # Larger aligned shape exercising the multi-block (>=2 grid steps) path.
    x1 = jax.random.normal(jax.random.PRNGKey(2), (8, 32, 32, 32), dtype=jnp.float32) * 4.0
    y1 = jax.block_until_ready(h_sigmoid(x1))
    y1_ref = jnp.clip(x1 + 3.0, 0.0, 6.0) / 6.0
    assert y1.shape == x1.shape
    assert jnp.allclose(y1, y1_ref, atol=1e-6), "mismatch vs reference (multi-block path)"

    # Ragged shape exercising the prefix + jnp-tail fallback path.
    x2 = jax.random.normal(jax.random.PRNGKey(1), (2, 3, 7, 5), dtype=jnp.float32) * 4.0
    y2 = jax.block_until_ready(h_sigmoid(x2))
    y2_ref = jnp.clip(x2 + 3.0, 0.0, 6.0) / 6.0
    assert y2.shape == x2.shape
    assert jnp.allclose(y2, y2_ref, atol=1e-6), "mismatch vs reference (ragged path)"

    print("KERNEL_OK")
</pallas_src>

<mosaic_0001>
module attributes {stable_mosaic.version = 11 : i64} {
  func.func @_h_sigmoid_kernel(%arg0: i32, %arg1: memref<2x1024xf32, #tpu.memory_space<vmem>>, %arg2: memref<2x1024xf32, #tpu.memory_space<vmem>>) attributes {dimension_semantics = [#tpu.dimension_semantics<parallel>], iteration_bounds = array<i64: 1>, scalar_prefetch = 0 : i64, scratch_operands = 0 : i64, tpu.core_type = #tpu.core_type<tc>, window_params = [{transform_indices = @transform_0, window_bounds = array<i64: 2, 1024>}, {transform_indices = @transform_1, window_bounds = array<i64: 2, 1024>}]} {
    %c0 = arith.constant 0 : index
    %c0_0 = arith.constant 0 : index
    %0 = vector.load %arg1[%c0, %c0_0] : memref<2x1024xf32, #tpu.memory_space<vmem>>, vector<2x1024xf32>
    %cst = arith.constant 3.000000e+00 : f32
    %1 = vector.broadcast %cst : f32 to vector<2x1024xf32>
    %2 = arith.addf %0, %1 : vector<2x1024xf32>
    %cst_1 = arith.constant 0.000000e+00 : f32
    %cst_2 = arith.constant 6.000000e+00 : f32
    %3 = vector.broadcast %cst_1 : f32 to vector<2x1024xf32>
    %4 = arith.maximumf %3, %2 : vector<2x1024xf32>
    %5 = vector.broadcast %cst_2 : f32 to vector<2x1024xf32>
    %6 = arith.minimumf %5, %4 : vector<2x1024xf32>
    %cst_3 = arith.constant 0.166666672 : f32
    %7 = vector.broadcast %cst_3 : f32 to vector<2x1024xf32>
    %8 = arith.mulf %6, %7 : vector<2x1024xf32>
    %c0_4 = arith.constant 0 : index
    %c0_5 = arith.constant 0 : index
    %9 = vector.load %arg2[%c0_4, %c0_5] : memref<2x1024xf32, #tpu.memory_space<vmem>>, vector<2x1024xf32>
    tpu.vector_store %arg2[%c0_4, %c0_5], %8 {strides = array<i32>} : memref<2x1024xf32, #tpu.memory_space<vmem>>, vector<2x1024xf32>,
    return
  }
  func.func @transform_0(%arg0: i32) -> (i32, i32) {
    %c0_i32 = arith.constant 0 : i32
    %c0_i32_0 = arith.constant 0 : i32
    return %arg0, %c0_i32 : i32, i32
  }
  func.func @transform_1(%arg0: i32) -> (i32, i32) {
    %c0_i32 = arith.constant 0 : i32
    %c0_i32_0 = arith.constant 0 : i32
    return %arg0, %c0_i32 : i32, i32
  }
}

</mosaic_0001>

<bundles_post_ra>
// kernel: tpu_custom_call.1
= control target key start
LH: loop header
LB: loop body
LE: loop exit
PB: predicated region body
PF: predicated region fallthrough
CT: control target
= control target key end

     0   :  { %6 = vsyncpa [#allocation3], 0  ;;  %s124_s0 = inlined_call_operand.hbm [shape: f32[2,1024], index: 0, kind: input, shape index: {}]   ;;  %s125_s1 = inlined_call_operand.hbm [shape: f32[2,1024], index: 1, kind: output, shape index: {}]  }
   0x1   :  { %7 = vsyncpa [#allocation4], 0  ;;  %s13_s8 = sshll.u32 %s124_s0, 4  ;;  %s106_s9 = smov [#allocation2]   ;;  %s14_s8 = int_to_ptr.hbm [resolvable:$true] %s13_s8 }
   0x2   :  { %s15_s10 = sshll.u32 %s106_s9, 4  ;;  %s16_s10 = int_to_ptr.vmem [resolvable:$true] %s15_s10 }
   0x3   :  { %18 = dma.hbm_to_vmem [thread:$0]  %s14_s8, 256, %s16_s10, [#allocation3]  }
   0x4   :  { %102 = dma.done.wait [#allocation3], 256  }
   0x5   :  { %103 = vsyncadd [#allocation3], 4294967040  ;;  %v23_v0 = vld [vmem:[#allocation2] sm:$0xff]  ;;  %v24_v1 = vld [vmem:[#allocation2 + $0x8] sm:$0xff]  ;;  %s107_s11 = smov [#allocation5]   ;;  %s42_s0 = sshll.u32 %s125_s1, 4  ;;  %s43_s0 = int_to_ptr.hbm [resolvable:$true] %s42_s0 }
   0x6   :  { %v25_v2 = vadd.f32 3.0, %v23_v0  ;;  %v26_v3 = vadd.f32 3.0, %v24_v1  ;;  %s40_s12 = sshll.u32 %s107_s11, 4  ;;  %s41_s12 = int_to_ptr.vmem [resolvable:$true] %s40_s12 }
   0x8   :  { %v27_v4 = vmax.f32 %v25_v2, 0.0  ;;  %v28_v5 = vmax.f32 %v26_v3, 0.0 }
   0xa   :  { %v29_v6 = vmin.f32 %v27_v4, 6.0  ;;  %v30_v7 = vmin.f32 %v28_v5, 6.0 }
   0xc   :  { %v31_v8 = vmul.f32 0.16666667, %v29_v6  ;;  %v32_v9 = vmul.f32 0.16666667, %v30_v7 }
   0xe   :  { %33 = vst [vmem:[#allocation5] sm:$0xff] %v31_v8 }
   0xf   :  { %34 = vst [vmem:[#allocation5 + $0x8] sm:$0xff] %v32_v9 }
  0x10   :  { %45 = dma.vmem_to_hbm [thread:$0]  %s41_s12, 256, %s43_s0, [#allocation4]  }
  0x11   :  { %104 = dma.done.wait [#allocation4], 256  }
  0x12   :  { %105 = vsyncadd [#allocation4], 4294967040 }
  0x13   :  { %50 = vsyncpa [#allocation3], 1 }
  0x14   :  { %51 = vsyncpa [#allocation4], 1 }

</bundles_post_ra>
